<compile_context>
chip_gen: v6e
topology: v6e:2x2x1
jax: 0.10.0
libtpu: 0.0.40
codegen_flags: <defaults>
</compile_context>

<pallas_src>
import math

import jax
import jax.numpy as jnp
from jax.experimental import pallas as pl
from jax.experimental.pallas import tpu as pltpu


def _make_pe(max_len: int, d_model: int) -> jnp.ndarray:
    """Sinusoidal positional-encoding buffer, shape (max_len, 1, d_model)."""
    position = jnp.arange(0, max_len, dtype=jnp.float32)[:, None]            # (max_len, 1)
    div_term = jnp.exp(
        jnp.arange(0, d_model, 2, dtype=jnp.float32) * (-math.log(10000.0) / d_model)
    )                                                                         # (d_model//2,)
    angles = position * div_term                                              # (max_len, d_model//2)
    pe = jnp.zeros((max_len, d_model), dtype=jnp.float32)
    pe = pe.at[:, 0::2].set(jnp.sin(angles))
    pe = pe.at[:, 1::2].set(jnp.cos(angles))
    return pe[:, None, :]                                                     # (max_len, 1, d_model)


def _pe_add_transpose_kernel(x_ref, pe_ref, o_ref):
    # x_ref:  (tile_b, tile_s, D)  batch-major input slab (sublane=tile_s, lane=D)
    # pe_ref: (tile_s, D)          sublane- and lane-dense pe slab
    # o_ref:  (tile_s, tile_b, D)  seq-major output slab
    x_t = jnp.swapaxes(x_ref[...], 0, 1)   # lane dim unchanged -> cheap sublane shuffle,
                                           # fully hidden behind the HBM DMAs
    o_ref[...] = (x_t + pe_ref[...][:, None, :]).astype(o_ref.dtype)


def _choose_tiles(B, S, D, itemsize, target_tile_bytes):
    """Pick (tile_s, tile_b): sublane-full, lane-dense tiles of ~target_tile_bytes."""
    # Batch tile: keep full batch unless even one 8-row seq slab of the whole
    # batch overflows the budget; then use a multiple-of-8 divisor of B.
    tile_b = B
    if B > 8 and B % 8 == 0 and 8 * B * D * itemsize > target_tile_bytes:
        tile_b = 8
        while (tile_b * 2 <= B and B % (tile_b * 2) == 0
               and 8 * (tile_b * 2) * D * itemsize <= target_tile_bytes):
            tile_b *= 2
    # Seq tile: multiple of 8, sized so one x tile is ~target_tile_bytes.
    rows = max(8, target_tile_bytes // max(1, tile_b * D * itemsize))
    tile_s = (rows // 8) * 8
    if tile_s >= S:
        tile_s = S
        # Keep >=2 grid steps along seq when possible so the grid can shard
        # across both TensorCores on v7x (megacore).
        if S >= 16:
            tile_s = ((S + 1) // 2 + 7) // 8 * 8
    return int(tile_s), int(tile_b)


def positional_encoding_forward(
    x: jnp.ndarray,
    pe: jnp.ndarray,
    *,
    tile_s: int | None = None,
    tile_b: int | None = None,
    target_tile_bytes: int = 4 << 20,
):
    """x: (batch, seq, d_model); pe: (max_len, 1, d_model). Returns (seq, batch, d_model)."""
    B, S, D = x.shape
    max_len = pe.shape[0]
    if S > max_len:
        raise ValueError(f"sequence length {S} exceeds positional-encoding max_len {max_len}")

    itemsize = int(jnp.dtype(x.dtype).itemsize)
    auto_s, auto_b = _choose_tiles(B, S, D, itemsize, target_tile_bytes)
    tile_s = auto_s if tile_s is None else int(tile_s)
    tile_b = auto_b if tile_b is None else int(tile_b)
    if tile_s != S and (tile_s % 8 != 0 or tile_s > S):
        raise ValueError(f"tile_s={tile_s} must equal S={S} or be a multiple of 8 and <= S")
    if tile_b != B and (tile_b % 8 != 0 or tile_b > B):
        raise ValueError(f"tile_b={tile_b} must equal B={B} or be a multiple of 8 and <= B")

    # Dense 2-D pe slab (S, D), pre-cast to x dtype: sublane/lane dense in VMEM
    # (no 8x sublane padding from a size-1 middle dim) and single-dtype add.
    pe_s = pe[:S, 0, :].astype(x.dtype)                  # (S, D)
    grid = (pl.cdiv(S, tile_s), pl.cdiv(B, tile_b))      # ragged tails padded/masked by Pallas

    bytes_accessed = int(2 * S * B * D * itemsize + S * D * itemsize)
    cost = pl.CostEstimate(flops=int(S * B * D), transcendentals=0,
                           bytes_accessed=bytes_accessed)

    out = pl.pallas_call(
        _pe_add_transpose_kernel,
        out_shape=jax.ShapeDtypeStruct((S, B, D), x.dtype),
        grid_spec=pltpu.PrefetchScalarGridSpec(
            num_scalar_prefetch=0,
            grid=grid,
            in_specs=[
                # x stays batch-first in HBM; the transpose happens per-tile in VMEM.
                pl.BlockSpec((tile_b, tile_s, D), lambda s, b: (b, s, 0)),
                # pe block index is constant across the inner (batch) grid axis,
                # so its DMA is skipped on revisits.
                pl.BlockSpec((tile_s, D), lambda s, b: (s, 0)),
            ],
            out_specs=pl.BlockSpec((tile_s, tile_b, D), lambda s, b: (s, b, 0)),
        ),
        compiler_params=pltpu.CompilerParams(
            dimension_semantics=("parallel", "parallel"),
            vmem_limit_bytes=48 * 1024 * 1024,
        ),
        cost_estimate=cost,
    )(x, pe_s)
    return out


if __name__ == "__main__":
    # Small, deterministic example shapes.
    batch, seq, d_model, max_len = 2, 8, 32, 16

    key = jax.random.PRNGKey(0)
    x = jax.random.normal(key, (batch, seq, d_model), dtype=jnp.float32)
    pe = _make_pe(max_len, d_model)

    out = positional_encoding_forward(x, pe)
    out = jax.block_until_ready(out)

    # Reference check in plain JAX (same semantics as the PyTorch forward).
    ref = jnp.transpose(x, (1, 0, 2)) + pe[:seq]
    assert out.shape == (seq, batch, d_model)
    assert jnp.allclose(out, ref, atol=1e-6), "mismatch vs reference"

    print("KERNEL_OK")
</pallas_src>

<mosaic_0001>
module attributes {stable_mosaic.version = 11 : i64} {
  func.func @_pe_add_transpose_kernel(%arg0: i32, %arg1: i32, %arg2: memref<2x8x32xf32, #tpu.memory_space<vmem>>, %arg3: memref<8x32xf32, #tpu.memory_space<vmem>>, %arg4: memref<8x2x32xf32, #tpu.memory_space<vmem>>) attributes {dimension_semantics = [#tpu.dimension_semantics<parallel>, #tpu.dimension_semantics<parallel>], iteration_bounds = array<i64: 1, 1>, scalar_prefetch = 0 : i64, scratch_operands = 0 : i64, tpu.core_type = #tpu.core_type<tc>, window_params = [{transform_indices = @transform_0, window_bounds = array<i64: 2, 8, 32>}, {transform_indices = @transform_1, window_bounds = array<i64: 8, 32>}, {transform_indices = @transform_2, window_bounds = array<i64: 8, 2, 32>}]} {
    %c0 = arith.constant 0 : index
    %c0_0 = arith.constant 0 : index
    %c0_1 = arith.constant 0 : index
    %0 = vector.load %arg2[%c0, %c0_0, %c0_1] : memref<2x8x32xf32, #tpu.memory_space<vmem>>, vector<2x8x32xf32>
    %1 = tpu.transpose %0, [1, 0, 2] : vector<2x8x32xf32> -> vector<8x2x32xf32>
    %c0_2 = arith.constant 0 : index
    %c0_3 = arith.constant 0 : index
    %2 = vector.load %arg3[%c0_2, %c0_3] : memref<8x32xf32, #tpu.memory_space<vmem>>, vector<8x32xf32>
    %3 = vector.shape_cast %2 : vector<8x32xf32> to vector<8x1x32xf32>
    %4 = vector.broadcast %3 : vector<8x1x32xf32> to vector<8x2x32xf32>
    %5 = arith.addf %1, %4 : vector<8x2x32xf32>
    %c0_4 = arith.constant 0 : index
    %c0_5 = arith.constant 0 : index
    %c0_6 = arith.constant 0 : index
    %6 = vector.load %arg4[%c0_4, %c0_5, %c0_6] : memref<8x2x32xf32, #tpu.memory_space<vmem>>, vector<8x2x32xf32>
    tpu.vector_store %arg4[%c0_4, %c0_5, %c0_6], %5 {strides = array<i32>} : memref<8x2x32xf32, #tpu.memory_space<vmem>>, vector<8x2x32xf32>,
    return
  }
  func.func @transform_0(%arg0: i32, %arg1: i32) -> (i32, i32, i32) {
    %c0_i32 = arith.constant 0 : i32
    %c0_i32_0 = arith.constant 0 : i32
    return %arg1, %arg0, %c0_i32 : i32, i32, i32
  }
  func.func @transform_1(%arg0: i32, %arg1: i32) -> (i32, i32) {
    %c0_i32 = arith.constant 0 : i32
    %c0_i32_0 = arith.constant 0 : i32
    return %arg0, %c0_i32 : i32, i32
  }
  func.func @transform_2(%arg0: i32, %arg1: i32) -> (i32, i32, i32) {
    %c0_i32 = arith.constant 0 : i32
    %c0_i32_0 = arith.constant 0 : i32
    return %arg0, %arg1, %c0_i32 : i32, i32, i32
  }
}

</mosaic_0001>

<bundles_post_ra>
// kernel: tpu_custom_call.1
= control target key start
LH: loop header
LB: loop body
LE: loop exit
PB: predicated region body
PF: predicated region fallthrough
CT: control target
= control target key end

     0   :  { %7 = vsyncpa [#allocation3], 0  ;;  %s352_s0 = inlined_call_operand.hbm [shape: f32[2,8,32], index: 0, kind: input, shape index: {}]   ;;  %s353_s1 = inlined_call_operand.hbm [shape: f32[8,32], index: 1, kind: input, shape index: {}]   ;;  %s354_s2 = inlined_call_operand.hbm [shape: f32[8,2,32], index: 2, kind: output, shape index: {}]  }
   0x1   :  { %8 = vsyncpa [#allocation6], 0 }
   0x2   :  { %9 = vsyncpa [#allocation4], 0  ;;  %s309_s9 = smov [#allocation2]  }
   0x3   :  { %s15_s10 = sshll.u32 %s309_s9, 4  ;;  %s16_s10 = int_to_ptr.vmem [resolvable:$true] %s15_s10 }
   0x4   :  { %s251_s11 = scalar_lea.vmem %s16_s10, 256  ;;  %p256_p1 = scmp.lt.s32.totalorder %s16_s10, %s16_s10 }
   0x5   :  { %p252_p0 = scmp.ne.s32.totalorder %s16_s10, %s251_s11  ;;  %p257_p2 = scmp.lt.s32.totalorder %s251_s11, %s251_s11 }
   0x7   :  { %p258_p3 = por %p257_p2, %p256_p1 }
   0x9   :  { %p259_p4 = pnand %p258_p3, %p252_p0 }
   0xb   :  { %262 = shalt.err (!%p259_p4)
}
   0xc   :  { %s310_s12 = smov 128   ;;  %s311_s13 = smov 8  }
   0xd   :  { %21 = dma.hbm_to_vmem [thread:$0]  %s352_s0, 256, %s16_s10, [#allocation3], %s310_s12, %s310_s12, %s311_s13  }
   0xe   :  { %s312_s16 = smov [#allocation5]  }
   0xf   :  { %s28_s17 = sshll.u32 %s312_s16, 4  ;;  %s29_s17 = int_to_ptr.vmem [resolvable:$true] %s28_s17 }
  0x10   :  { %s271_s18 = scalar_lea.vmem %s29_s17, 128  ;;  %p276_p6 = scmp.lt.s32.totalorder %s29_s17, %s29_s17 }
  0x11   :  { %p272_p5 = scmp.ne.s32.totalorder %s29_s17, %s271_s18  ;;  %p277_p7 = scmp.lt.s32.totalorder %s271_s18, %s271_s18 }
  0x13   :  { %p278_p8 = por %p277_p7, %p276_p6 }
  0x15   :  { %p279_p9 = pnand %p278_p8, %p272_p5 }
  0x17   :  { %282 = shalt.err (!%p279_p9)
}
  0x18   :  { %31 = dma.hbm_to_vmem [thread:$0]  %s353_s1, 128, %s29_s17, [#allocation6]  }
  0x19   :  { %303 = dma.done.wait [#allocation3], 256  }
  0x1a   :  { %304 = vsyncadd [#allocation3], 4294967040 }
  0x1b   :  { %305 = dma.done.wait [#allocation6], 128  }
  0x1c   :  { %306 = vsyncadd [#allocation6], 4294967168  ;;  %v44_v0 = vlaneseq  ;;  %v313_v1 = vmov 1983009808   ;;  %v314_v3 = vmov 1934713408  }
  0x1d   :  { %v42_v2 = vunpack.c.l.s4 %v313_v1  ;;  %v73_v4 = vunpack.c.l.s4 %v314_v3  ;;  %v315_v6 = vmov 1966171168   ;;  %v38_v13 = vld [vmem:[#allocation2] sm:$0xff]  ;;  %v39_v14 = vld [vmem:[#allocation2 + $0x8] sm:$0xff]  ;;  %v106_v16 = vld [vmem:[#allocation5] sm:$0xff]  ;;  %v316_v21 = vmov 0.0  }
  0x1e   :  { %v45_v5 = vshrl.u32 %v44_v0, 7  ;;  %v110_v7 = vunpack.c.l.s4 %v315_v6  ;;  %v40_v22 = vcombine.high %v38_v13, %v316_v21  ;;  %v55_v23 = vcombine.high %v39_v14, %v316_v21  ;;  %s317_s0 = smov [#allocation7]  }
  0x1f   :  { %v43_v8 = vunpack.c.0.s8 %v42_v2  ;;  %v74_v9 = vunpack.c.0.s8 %v73_v4  ;;  %v108_v24 = vcombine.high %v106_v16, %v106_v16  ;;  %vm205_vm0 = vcmask 254976   ;;  %s219_s1 = sshll.u32 %s317_s0, 4  ;;  %s220_s1 = int_to_ptr.vmem [resolvable:$true] %s219_s1 }
  0x20   :  { %v111_v10 = vunpack.c.0.s8 %v110_v7  ;;  %v159_v17 = vsub.s32 0, %v45_v5  ;;  %s283_s21 = scalar_lea.vmem %s220_s1, 256  ;;  %p288_p11 = scmp.lt.s32.totalorder %s220_s1, %s220_s1 }
  0x21   :  { %v46_v11 = vsub.s32 %v43_v8, %v45_v5  ;;  %v77_v15 = vsub.s32 %v74_v9, %v45_v5  ;;  %p284_p10 = scmp.ne.s32.totalorder %s220_s1, %s283_s21  ;;  %p289_p12 = scmp.lt.s32.totalorder %s283_s21, %s283_s21 }
  0x22   :  { %v114_v12 = vsub.s32 %v111_v10, %v45_v5 }
  0x23   :  { %v47_v18 = vrot.slane %v38_v13, %v46_v11  ;;  %v62_v19 = vrot.slane %v39_v14, %v46_v11  ;;  %v54_v29 = vrot.slane %v40_v22, %v46_v11  ;;  %v69_v30 = vrot.slane %v55_v23, %v46_v11  ;;  %p290_p13 = por %p289_p12, %p288_p11 }
  0x24   :  { %v115_v20 = vrot.slane %v106_v16, %v114_v12  ;;  %v122_v31 = vrot.slane %v108_v24, %v114_v12 }
  0x25   :  { %v70_v25 = vcombine.low %v47_v18, %v62_v19  ;;  %v71_v28 = vcombine.high %v47_v18, %v62_v19  ;;  %v86_v37 = vcombine.low %v54_v29, %v69_v30  ;;  %v87_v50 = vcombine.high %v54_v29, %v69_v30  ;;  %p291_p0 = pnand %p290_p13, %p284_p10 }
  0x26   :  { %v131_v26 = vrot.slane %v115_v20, %v114_v12  ;;  %v123_v27 = vcombine.high %v115_v20, %v115_v20  ;;  %v138_v38 = vrot.slane %v122_v31, %v114_v12  ;;  %v124_v39 = vcombine.high %v122_v31, %v122_v31 }
  0x27   :  { %v78_v32 = vrot.slane %v70_v25, %v77_v15  ;;  %v85_v35 = vrot.slane %v71_v28, %v77_v15  ;;  %v94_v46 = vrot.slane %v86_v37, %v77_v15  ;;  %v101_v57 = vrot.slane %v87_v50, %v77_v15 }
  0x28   :  { %v160_v33 = vrot.slane %v131_v26, %v159_v17  ;;  %v145_v34 = vrot.slane %v123_v27, %v114_v12  ;;  %v153_v36 = vcombine.high %v131_v26, %v131_v26  ;;  %v176_v47 = vrot.slane %v138_v38, %v159_v17 }
  0x29   :  { %v102_v41 = vcombine.high %v78_v32, %v316_v21  ;;  %v103_v43 = vcombine.high %v85_v35, %v316_v21  ;;  %v152_v49 = vrot.slane %v124_v39, %v114_v12  ;;  %v154_v51 = vcombine.high %v138_v38, %v138_v38 }
  0x2a   :  { %v197_v40 = vadd.f32 %v160_v33, %v78_v32  ;;  %v164_v42 = vrot.slane %v145_v34, %v159_v17  ;;  %v168_v44 = vrot.slane %v153_v36, %v159_v17  ;;  %v155_v45 = vcombine.high %v145_v34, %v145_v34 }
  0x2b   :  { %v201_v54 = vadd.f32 %v176_v47, %v94_v46  ;;  %v104_v55 = vcombine.high %v94_v46, %v316_v21  ;;  %v180_v56 = vrot.slane %v152_v49, %v159_v17  ;;  %v184_v58 = vrot.slane %v154_v51, %v159_v17 }
  0x2c   :  { %206 = vst.msk [vmem:[#allocation7] sm:$0x3] %vm205_vm0, %v197_v40  ;;  %v198_v48 = vadd.f32 %v164_v42, %v102_v41  ;;  %v199_v52 = vadd.f32 %v168_v44, %v85_v35  ;;  %v172_v53 = vrot.slane %v155_v45, %v159_v17  ;;  %v156_v59 = vcombine.high %v152_v49, %v152_v49 }
  0x2d   :  { %210 = vst.msk [vmem:[#allocation7 + $0x8] sm:$0x3] %vm205_vm0, %v201_v54  ;;  %v202_v61 = vadd.f32 %v180_v56, %v104_v55  ;;  %v203_v62 = vadd.f32 %v184_v58, %v101_v57  ;;  %v105_v63 = vcombine.high %v101_v57, %v316_v21 }
  0x2e   :  { %207 = vst.msk [vmem:[#allocation7 + $0x2] sm:$0x3] %vm205_vm0, %v198_v48  ;;  %208 = vst.msk [vmem:[#allocation7 + $0x4] sm:$0x3] %vm205_vm0, %v199_v52  ;;  %v200_v60 = vadd.f32 %v172_v53, %v103_v43  ;;  %v188_v0 = vrot.slane %v156_v59, %v159_v17 }
  0x2f   :  { %211 = vst.msk [vmem:[#allocation7 + $0xa] sm:$0x3] %vm205_vm0, %v202_v61  ;;  %212 = vst.msk [vmem:[#allocation7 + $0xc] sm:$0x3] %vm205_vm0, %v203_v62 }
  0x30   :  { %209 = vst.msk [vmem:[#allocation7 + $0x6] sm:$0x3] %vm205_vm0, %v200_v60  ;;  %v204_v1 = vadd.f32 %v188_v0, %v105_v63 }
  0x32   :  { %213 = vst.msk [vmem:[#allocation7 + $0xe] sm:$0x3] %vm205_vm0, %v204_v1 }
  0x33   :  { %294 = shalt.err (!%p291_p0)
}
  0x34   :  { %s318_s22 = smov 32   ;;  %s319_s23 = smov 2  }
  0x35   :  { %225 = dma.vmem_to_hbm [thread:$0]  %s220_s1, 256, %s354_s2, [#allocation4], %s318_s22, %s318_s22, %s319_s23  }
  0x36   :  { %307 = dma.done.wait [#allocation4], 256  }
  0x37   :  { %308 = vsyncadd [#allocation4], 4294967040 }
  0x38   :  { %229 = vsyncpa [#allocation3], 1 }
  0x39   :  { %230 = vsyncpa [#allocation6], 1 }
  0x3a   :  { %231 = vsyncpa [#allocation4], 1 }

</bundles_post_ra>
